<compile_context>
chip_gen: v5e
topology: v5e:2x2
jax: 0.10.0
libtpu: 0.0.40
codegen_flags: <defaults>
</compile_context>

<pallas_src>
from functools import partial

import numpy as np
import jax
import jax.numpy as jnp
from jax import lax
from jax.experimental import pallas as pl
from jax.experimental.pallas import tpu as pltpu


def _round_up(x, m):
    return (x + m - 1) // m * m


def _cdiv(a, b):
    return (a + b - 1) // b


# ----------------------------------------------------------------------------- kernel
def _kmer_embed_kernel(x_ref, w_ref, out_ref, *, pos_chunk, n_chunks):
    """One (batch-tile, kmer-tile) grid step.

    x_ref  : [tile_nm, L_out_p, KA1]  im2col windows + constant-1 bias column (bf16/f32)
    w_ref  : [KA1, tile_nk]           flattened kmer one-hot weights + bias row
    out_ref: [tile_nm, tile_nk]       per-sequence kmer counts (f32)

    conv1d + bias == a single matmul with contraction dim KA1 = K*A + 1 (bias folded
    in via the constant-1 column).  relu + position-sum are fused per position chunk
    into an output-sized accumulator.
    """
    tile_nm, l_out_p, ka1 = x_ref.shape
    nk = w_ref.shape[1]
    rows = tile_nm * pos_chunk
    w = w_ref[...]                                   # loaded once per tile

    def chunk_sum(xc3):
        # xc3: [tile_nm, pos_chunk, ka1]; pos_chunk % 16 == 0 -> reshapes are layout no-ops.
        xc = xc3.reshape(rows, ka1)
        s = jnp.dot(xc, w, preferred_element_type=jnp.float32)   # conv + bias (one MXU pass)
        s = jnp.maximum(s, 0.0)                                  # relu
        return s.reshape(tile_nm, pos_chunk, nk).sum(axis=1)     # sum over chunk positions

    if n_chunks <= 16:
        # Static unroll (typical case: a handful of chunks).
        acc = chunk_sum(x_ref[:, 0:pos_chunk, :])
        for c in range(1, n_chunks):
            acc = acc + chunk_sum(x_ref[:, c * pos_chunk:(c + 1) * pos_chunk, :])
    else:
        def body(c, acc):
            start = pl.multiple_of(c * pos_chunk, pos_chunk)
            return acc + chunk_sum(x_ref[:, pl.ds(start, pos_chunk), :])
        acc = lax.fori_loop(1, n_chunks, body, chunk_sum(x_ref[:, 0:pos_chunk, :]))

    out_ref[...] = acc.astype(out_ref.dtype)


# ------------------------------------------------------------------------- tile picking
def _vmem_budget():
    """(tile budget bytes, vmem_limit_bytes), generation-aware (v7x has only 64 MiB VMEM)."""
    try:
        cap = int(getattr(pltpu.get_tpu_info(), "vmem_capacity_bytes", 64 << 20))
    except Exception:
        cap = 64 << 20            # conservative default if the query is unavailable
    if cap <= (64 << 20):         # v7x-class
        return 24 << 20, 40 << 20
    return 40 << 20, 64 << 20     # v5e / v6e (128 MiB physical)


def _pick_tile_nm(nm, l_out16, ka1, tile_nk, budget_bytes):
    """Largest batch tile (multiple of 8, <= 512) under the VMEM budget.

    The minor dim of the im2col block is KA1 (tiny): Mosaic pads it to a full 128-lane
    tile in VMEM, so the footprint below accounts for that blow-up explicitly.
    """
    lanes_x = _round_up(ka1, 128)
    fixed = 2 * _round_up(ka1, 16) * tile_nk * 2               # weight block (bf16, dbl-buffered)
    per_row = (2 * l_out16 * lanes_x * 2                       # im2col block (bf16, dbl-buffered, lane-padded)
               + 2 * tile_nk * 4                               # out block (f32, dbl-buffered)
               + tile_nk * 4                                   # f32 accumulator
               + 16 * tile_nk * 4 * 2                          # per-chunk matmul + relu intermediates (P=16)
               + 16 * lanes_x * 2)                             # per-chunk im2col slab
    avail = max(budget_bytes - fixed, per_row * 8)
    tile = max(8, min(512, (avail // per_row) // 8 * 8))
    return min(tile, _round_up(nm, 8))


def _pick_pos_chunk(tile_nm, tile_nk, l_out, *, max_rows=2048, interm_budget=4 << 20):
    """Largest 16-aligned chunk of positions that divides L_out_p while keeping the
    per-chunk [tile_nm*P, tile_nk] f32 intermediate small (rows stay MXU-saturated)."""
    l16 = _round_up(l_out, 16)
    n16 = l16 // 16
    best = 16
    for d in range(1, n16 + 1):
        if n16 % d:
            continue
        p = 16 * d
        rows = p * tile_nm
        if rows <= max_rows and rows * tile_nk * 4 * 2 <= interm_budget:
            best = p
    return best, l16


# -------------------------------------------------------------------------- parameters
def make_kmer_params(alphabet, kmer_length, dtype=jnp.float32):
    """Deterministic parameter construction mirroring KmerEmbed.__init__."""
    A = len(alphabet)
    if alphabet[-1] == '*':
        A -= 1
    n_kmers = A ** kmer_length
    idx = np.arange(n_kmers)
    # kmers[i, j] = j-th (most-significant-first) base-A digit of i (matches torch enumeration)
    kmers = np.stack([(idx // (A ** (kmer_length - 1 - j))) % A
                      for j in range(kmer_length)], axis=-1)               # [n_kmers, K]
    # one_hot(kmers, A).swapaxes(-2, -1) -> [n_kmers, A, K]
    weight = (kmers[:, None, :] == np.arange(A)[None, :, None]).astype(np.float32)
    bias = (1 - kmer_length) * np.ones(n_kmers, dtype=np.float32)
    return jnp.asarray(weight, dtype), jnp.asarray(bias, dtype), A, n_kmers


# ----------------------------------------------------------------------------- forward
def kmer_embed_forward(seqs, weight, bias, alphabet_length, *, compute_dtype=jnp.bfloat16):
    """seqs: [N, M, L, B] with B >= alphabet_length; returns [N, M, n_kmers]."""
    N, M, L, B = seqs.shape
    n_kmers, A, K = weight.shape
    assert A == alphabet_length and B >= A
    L_out = L - K + 1
    assert L_out >= 1
    NM = N * M
    KA = K * A
    KA1 = KA + 1                                  # +1: constant-1 column carrying the bias

    # Lane-dense kmer tiling (>= 256 wide whenever the problem allows: v6e/v7x MXU width).
    if n_kmers <= 128:
        tile_nk = 128
    else:
        tile_nk = min(512, _round_up(n_kmers, 256))
    nk_p = _round_up(n_kmers, tile_nk)

    budget, vmem_limit = _vmem_budget()
    l16 = _round_up(L_out, 16)
    tile_nm = _pick_tile_nm(NM, l16, KA1, tile_nk, budget)
    # Keep >= 2 grid steps so both v7x TensorCores get work (when the batch allows it).
    nm8 = _round_up(NM, 8)
    while _cdiv(nm8, tile_nm) * (nk_p // tile_nk) < 2 and tile_nm >= 16:
        tile_nm = _round_up(tile_nm // 2, 8)
    NM_pad = _round_up(nm8, tile_nm)

    pos_chunk, L_out_p = _pick_pos_chunk(tile_nm, tile_nk, L_out)
    n_chunks = L_out_p // pos_chunk

    # im2col in the wrapper: x[n, t, j*A + a] = oh[n, t+j, a]; the last column is 1 for
    # valid positions (carries the bias) and 0 for padded rows, so padded positions
    # contribute relu(0) = 0 to the sum regardless of the bias sign.
    oh = seqs[..., :A].reshape(NM, L, A).astype(compute_dtype)
    win = jnp.concatenate([oh[:, j:j + L_out, :] for j in range(K)], axis=-1)      # [NM, L_out, K*A]
    ones = jnp.ones((NM, L_out, 1), compute_dtype)
    x = jnp.concatenate([win, ones], axis=-1)                                      # [NM, L_out, KA1]
    x_p = jnp.zeros((NM_pad, L_out_p, KA1), compute_dtype).at[:NM, :L_out, :].set(x)

    # Flattened weights [K*A, n_kmers] with the bias as an extra contraction row.
    # (bias = 1-K is an exact bf16 value; use compute_dtype=f32 for arbitrary bias.)
    w_flat = jnp.transpose(weight, (2, 1, 0)).reshape(KA, n_kmers)
    w_aug = jnp.concatenate([w_flat, bias.reshape(1, n_kmers)], axis=0).astype(compute_dtype)
    w_p = jnp.zeros((KA1, nk_p), compute_dtype).at[:, :n_kmers].set(w_aug)

    grid = (NM_pad // tile_nm, nk_p // tile_nk)   # kmer axis innermost: im2col block stays resident

    cd_bytes = np.dtype(compute_dtype).itemsize
    cost = pl.CostEstimate(
        flops=int(2 * NM * L_out * KA1 * n_kmers),
        transcendentals=0,
        bytes_accessed=int(NM_pad * L_out_p * KA1 * cd_bytes
                           + KA1 * nk_p * cd_bytes * grid[0]
                           + NM_pad * nk_p * 4))

    out_p = pl.pallas_call(
        partial(_kmer_embed_kernel, pos_chunk=pos_chunk, n_chunks=n_chunks),
        out_shape=jax.ShapeDtypeStruct((NM_pad, nk_p), jnp.float32),
        grid=grid,
        in_specs=[
            pl.BlockSpec((tile_nm, L_out_p, KA1), lambda i, j: (i, 0, 0)),
            pl.BlockSpec((KA1, tile_nk), lambda i, j: (0, j)),
        ],
        out_specs=pl.BlockSpec((tile_nm, tile_nk), lambda i, j: (i, j)),
        compiler_params=pltpu.CompilerParams(
            dimension_semantics=("parallel", "parallel"),
            vmem_limit_bytes=vmem_limit),
        cost_estimate=cost,
    )(x_p, w_p)

    return out_p[:NM, :n_kmers].reshape(N, M, n_kmers).astype(seqs.dtype)


# ---------------------------------------------------------------------------- reference
def kmer_embed_reference(seqs, weight, bias, alphabet_length):
    """Pure-JAX reference reproducing the torch forward (conv1d + bias + relu + sum)."""
    N, M, L, B = seqs.shape
    n_kmers, A, K = weight.shape
    oh = seqs[..., :A].reshape(N * M, L, A).astype(jnp.float32)
    w = weight.astype(jnp.float32)
    L_out = L - K + 1
    conv = jnp.broadcast_to(bias.astype(jnp.float32)[None, :, None], (N * M, n_kmers, L_out))
    for j in range(K):
        conv = conv + jnp.einsum('nta,ka->nkt', oh[:, j:j + L_out, :], w[:, :, j])
    out = jnp.maximum(conv, 0.0).sum(axis=-1)
    return out.reshape(N, M, n_kmers).astype(seqs.dtype)


if __name__ == "__main__":
    key = jax.random.PRNGKey(0)
    k1, k2 = jax.random.split(key)

    # --- small DNA-sized problem (single grid step, single position chunk) ----------
    alphabet = "ACGT*"                  # trailing '*' channel is excluded from the one-hot alphabet
    kmer_length = 2
    N, M, L = 2, 3, 8
    weight, bias, A, n_kmers = make_kmer_params(alphabet, kmer_length)
    B = A + 1                           # extra '*' channel, sliced off inside forward
    ids = jax.random.randint(k1, (N, M, L), 0, B)
    seqs = jax.nn.one_hot(ids, B, dtype=jnp.float32)   # genuine one-hot -> bf16 path exact
    out = jax.block_until_ready(kmer_embed_forward(seqs, weight, bias, A))
    ref = kmer_embed_reference(seqs, weight, bias, A)
    np.testing.assert_allclose(np.asarray(out), np.asarray(ref), rtol=1e-5, atol=1e-5)
    assert out.shape == (N, M, n_kmers)

    # --- protein-sized alphabet: exercises wide kmer tile, position chunking, 2 batch tiles
    alphabet2 = "ACDEFGHIKLMNPQRSTVWY*"
    kmer_length2 = 2
    N2, M2, L2 = 8, 8, 80
    weight2, bias2, A2, n_kmers2 = make_kmer_params(alphabet2, kmer_length2)
    B2 = A2 + 1
    ids2 = jax.random.randint(k2, (N2, M2, L2), 0, B2)
    seqs2 = jax.nn.one_hot(ids2, B2, dtype=jnp.float32)
    out2 = jax.block_until_ready(kmer_embed_forward(seqs2, weight2, bias2, A2))
    ref2 = kmer_embed_reference(seqs2, weight2, bias2, A2)
    np.testing.assert_allclose(np.asarray(out2), np.asarray(ref2), rtol=1e-5, atol=1e-5)
    assert out2.shape == (N2, M2, n_kmers2)

    print("KERNEL_OK")
</pallas_src>

<mosaic_0001>
module attributes {stable_mosaic.version = 11 : i64} {
  func.func @_kmer_embed_kernel(%arg0: i32, %arg1: i32, %arg2: memref<8x16x9xbf16, #tpu.memory_space<vmem>>, %arg3: memref<9x128xbf16, #tpu.memory_space<vmem>>, %arg4: memref<8x128xf32, #tpu.memory_space<vmem>>) attributes {dimension_semantics = [#tpu.dimension_semantics<parallel>, #tpu.dimension_semantics<parallel>], iteration_bounds = array<i64: 1, 1>, scalar_prefetch = 0 : i64, scratch_operands = 0 : i64, tpu.core_type = #tpu.core_type<tc>, window_params = [{transform_indices = @transform_0, window_bounds = array<i64: 8, 16, 9>}, {transform_indices = @transform_1, window_bounds = array<i64: 9, 128>}, {transform_indices = @transform_2, window_bounds = array<i64: 8, 128>}]} {
    %c0 = arith.constant 0 : index
    %c0_0 = arith.constant 0 : index
    %0 = vector.load %arg3[%c0, %c0_0] : memref<9x128xbf16, #tpu.memory_space<vmem>>, vector<9x128xbf16>
    %c0_1 = arith.constant 0 : index
    %c0_2 = arith.constant 0 : index
    %c0_3 = arith.constant 0 : index
    %1 = vector.load %arg2[%c0_1, %c0_2, %c0_3] : memref<8x16x9xbf16, #tpu.memory_space<vmem>>, vector<8x16x9xbf16>
    %2 = vector.shape_cast %1 : vector<8x16x9xbf16> to vector<128x9xbf16>
    %cst = arith.constant dense<0.000000e+00> : vector<128x128xf32>
    %3 = tpu.matmul %2, %0, %cst {dimension_numbers = #tpu.dot_dimension_numbers<[1], [0], [0], [1], [0, 0, 1, 1], [], []>} : vector<128x9xbf16>, vector<9x128xbf16>, vector<128x128xf32> -> vector<128x128xf32>
    %cst_4 = arith.constant 0.000000e+00 : f32
    %4 = vector.broadcast %cst_4 : f32 to vector<128x128xf32>
    %5 = arith.maximumf %3, %4 : vector<128x128xf32>
    %6 = vector.shape_cast %5 : vector<128x128xf32> to vector<8x16x128xf32>
    %cst_5 = arith.constant dense<0.000000e+00> : vector<8x128xf32>
    %7 = vector.multi_reduction <add>, %6, %cst_5 [1] : vector<8x16x128xf32> to vector<8x128xf32>
    %c0_6 = arith.constant 0 : index
    %c0_7 = arith.constant 0 : index
    %8 = vector.load %arg4[%c0_6, %c0_7] : memref<8x128xf32, #tpu.memory_space<vmem>>, vector<8x128xf32>
    tpu.vector_store %arg4[%c0_6, %c0_7], %7 {strides = array<i32>} : memref<8x128xf32, #tpu.memory_space<vmem>>, vector<8x128xf32>,
    return
  }
  func.func @transform_0(%arg0: i32, %arg1: i32) -> (i32, i32, i32) {
    %c0_i32 = arith.constant 0 : i32
    %c0_i32_0 = arith.constant 0 : i32
    %c0_i32_1 = arith.constant 0 : i32
    return %arg0, %c0_i32, %c0_i32_0 : i32, i32, i32
  }
  func.func @transform_1(%arg0: i32, %arg1: i32) -> (i32, i32) {
    %c0_i32 = arith.constant 0 : i32
    %c0_i32_0 = arith.constant 0 : i32
    return %c0_i32, %arg1 : i32, i32
  }
  func.func @transform_2(%arg0: i32, %arg1: i32) -> (i32, i32) {
    %c0_i32 = arith.constant 0 : i32
    return %arg0, %arg1 : i32, i32
  }
}

</mosaic_0001>

<bundles_post_ra>
// kernel: tpu_custom_call.1
= control target key start
LH: loop header
LB: loop body
LE: loop exit
PB: predicated region body
PF: predicated region fallthrough
CT: control target
= control target key end

     0   :  { %vm101_vm0 = vcmask 1043456   ;;  %vm102_vm1 = vcmask 1044480   ;;  %v353_v3 = vmov 65535   ;;  %s411_s0 = inlined_call_operand.vmem [shape: bf16[8,16,9], index: 0, kind: input, shape index: {}]   ;;  %s412_s1 = inlined_call_operand.vmem [shape: bf16[9,128], index: 1, kind: input, shape index: {}]   ;;  %s413_s2 = inlined_call_operand.hbm [shape: f32[8,128], index: 2, kind: output, shape index: {}]  }
   0x1   :  { %v303_v0 = vld [vmem:[%s412_s1] sm:$0xf]  ;;  %v313_v1 = vld [vmem:[%s412_s1] sm:$0x10]  ;;  %v103_v4 = vsel %vm101_vm0, 4294967295, %v353_v3 }
   0x2   :  { %v304_v2 = vor.u32 %v313_v1, %v303_v0  ;;  %v104_v5 = vsel %vm102_vm1, %v103_v4, 0 }
   0x3   :  { %7 = vsyncpa [#allocation3], 0  ;;  %v314_v7 = vld [vmem:[%s411_s0] sm:$0xff]  ;;  %v316_v8 = vld [vmem:[%s411_s0 + $0x10] sm:$0xff]  ;;  %vm76_vm2 = vcmask 72704   ;;  %vm237_vm3 = vcmask 1041409  }
   0x4   :  { %v106_v6 = vand.u32 %v304_v2, %v104_v5  ;;  %v318_v9 = vld [vmem:[%s411_s0 + $0x20] sm:$0xff]  ;;  %v320_v10 = vld [vmem:[%s411_s0 + $0x30] sm:$0xff]  ;;  %v315_v11 = vld [vmem:[%s411_s0 + $0x8] sm:$0xff]  ;;  %vm239_vm4 = vcmask 1042434   ;;  %vm241_vm5 = vcmask 1043459   ;;  %vm243_vm6 = vcmask 1044484  }
   0x5   :  { %v317_v12 = vld [vmem:[%s411_s0 + $0x18] sm:$0xff]  ;;  %v319_v13 = vld [vmem:[%s411_s0 + $0x28] sm:$0xff]  ;;  %vm245_vm7 = vcmask 1045509   ;;  %vm247_vm8 = vcmask 1046534   ;;  %s260_s3 = sshll.u32 %s413_s2, 4  ;;  %vm249_vm9 = vcmask 1047559   ;;  %s261_s3 = int_to_ptr.hbm [resolvable:$true] %s260_s3 }
   0x6   :  { %115 = vmatpush.bf16.msra.mxu0 %v106_v6  ;;  %322 = vmatpush.bf16.msra.mxu1 %v106_v6  ;;  %v321_v14 = vld [vmem:[%s411_s0 + $0x38] sm:$0xff]  ;;  %s354_s0 = smov [#allocation2]  }
   0x7   :  { %323 = vmatpush.bf16.msra.mxu2 %v106_v6  ;;  %324 = vmatpush.bf16.msra.mxu3 %v106_v6  ;;  %s258_s28 = sshll.u32 %s354_s0, 4  ;;  %s259_s28 = int_to_ptr.vmem [resolvable:$true] %s258_s28 }
   0x9   :  { %305 = vmatmul.msk.bf16.vlgmr.msra.gmra.mxu0 %vm76_vm2, %v314_v7  ;;  %307 = vmatmul.msk.bf16.vlgmr.msra.gmra.mxu1 %vm76_vm2, %v316_v8 }
   0xa   :  { %309 = vmatmul.msk.bf16.vlgmr.msra.gmra.mxu2 %vm76_vm2, %v318_v9  ;;  %311 = vmatmul.msk.bf16.vlgmr.msra.gmra.mxu3 %vm76_vm2, %v320_v10 }
  0x19   :  { %306 = vmatmul.msk.bf16.gmra.mxu0 %vm76_vm2, %v315_v11  ;;  %308 = vmatmul.msk.bf16.gmra.mxu1 %vm76_vm2, %v317_v12 }
  0x1a   :  { %310 = vmatmul.msk.bf16.gmra.mxu2 %vm76_vm2, %v319_v13  ;;  %312 = vmatmul.msk.bf16.gmra.mxu3 %vm76_vm2, %v321_v14 }
  0x86   :  { %v117_v15 = vpop.f32.mrf.mxu0  ;;  %v127_v16 = vpop.f32.mrf.mxu1 }
  0x87   :  { %v157_v23 = vmax.f32 %v117_v15, 0.0  ;;  %v161_v24 = vmax.f32 %v127_v16, 0.0 }
  0x8d   :  { %v137_v17 = vpop.f32.mrf.mxu2  ;;  %v147_v18 = vpop.f32.mrf.mxu3 }
  0x8e   :  { %v119_v19 = vpop.f32.mrf.mxu0  ;;  %v129_v20 = vpop.f32.mrf.mxu1  ;;  %v165_v33 = vmax.f32 %v137_v17, 0.0  ;;  %v169_v36 = vmax.f32 %v147_v18, 0.0 }
  0x8f   :  { %v158_v21 = vmax.f32 %v119_v19, 0.0  ;;  %v162_v22 = vmax.f32 %v129_v20, 0.0 }
  0x91   :  { %v173_v25 = vadd.f32 %v158_v21, %v157_v23  ;;  %v187_v26 = vadd.f32 %v162_v22, %v161_v24 }
  0x93   :  { %v174_v32 = vrot.slane %v173_v25, 4  ;;  %v188_v34 = vrot.slane %v187_v26, 4 }
  0x95   :  { %v139_v27 = vpop.f32.mrf.mxu2  ;;  %v149_v28 = vpop.f32.mrf.mxu3  ;;  %v175_v38 = vadd.f32 %v174_v32, %v173_v25  ;;  %v189_v39 = vadd.f32 %v188_v34, %v187_v26 }
  0x96   :  { %v122_v29 = vpop.f32.mrf.mxu0  ;;  %v132_v30 = vpop.f32.mrf.mxu1  ;;  %v166_v31 = vmax.f32 %v139_v27, 0.0  ;;  %v170_v35 = vmax.f32 %v149_v28, 0.0 }
  0x97   :  { %v159_v43 = vmax.f32 %v122_v29, 0.0  ;;  %v163_v47 = vmax.f32 %v132_v30, 0.0  ;;  %v176_v50 = vrot.slane %v175_v38, 2  ;;  %v190_v51 = vrot.slane %v189_v39, 2 }
  0x98   :  { %v201_v37 = vadd.f32 %v166_v31, %v165_v33  ;;  %v215_v40 = vadd.f32 %v170_v35, %v169_v36 }
  0x99   :  { %v177_v58 = vadd.f32 %v176_v50, %v175_v38  ;;  %v191_v59 = vadd.f32 %v190_v51, %v189_v39 }
  0x9a   :  { %v202_v46 = vrot.slane %v201_v37, 4  ;;  %v216_v52 = vrot.slane %v215_v40, 4 }
  0x9b   :  { %v178_v10 = vrot.slane %v177_v58, 1  ;;  %v192_v14 = vrot.slane %v191_v59, 1 }
  0x9c   :  { %v203_v55 = vadd.f32 %v202_v46, %v201_v37  ;;  %v217_v60 = vadd.f32 %v216_v52, %v215_v40 }
  0x9d   :  { %v142_v41 = vpop.f32.mrf.mxu2  ;;  %v152_v42 = vpop.f32.mrf.mxu3  ;;  %v179_v22 = vadd.f32 %v178_v10, %v177_v58  ;;  %v193_v25 = vadd.f32 %v192_v14, %v191_v59 }
  0x9e   :  { %v124_v44 = vpop.f32.mrf.mxu0  ;;  %v134_v45 = vpop.f32.mrf.mxu1  ;;  %v167_v1 = vmax.f32 %v142_v41, 0.0  ;;  %v171_v2 = vmax.f32 %v152_v42, 0.0  ;;  %v204_v5 = vrot.slane %v203_v55, 2  ;;  %v218_v11 = vrot.slane %v217_v60, 2 }
  0x9f   :  { %v160_v48 = vmax.f32 %v124_v44, 0.0  ;;  %v164_v49 = vmax.f32 %v134_v45, 0.0 }
  0xa0   :  { %v205_v17 = vadd.f32 %v204_v5, %v203_v55  ;;  %v219_v23 = vadd.f32 %v218_v11, %v217_v60 }
  0xa1   :  { %v180_v53 = vadd.f32 %v160_v48, %v159_v43  ;;  %v194_v54 = vadd.f32 %v164_v49, %v163_v47 }
  0xa2   :  { %v206_v28 = vrot.slane %v205_v17, 1  ;;  %v220_v34 = vrot.slane %v219_v23, 1 }
  0xa3   :  { %v181_v56 = vrot.slane %v180_v53, 4  ;;  %v195_v57 = vrot.slane %v194_v54, 4 }
  0xa4   :  { %v207_v38 = vadd.f32 %v206_v28, %v205_v17  ;;  %v221_v40 = vadd.f32 %v220_v34, %v219_v23 }
  0xa5   :  { %v182_v61 = vadd.f32 %v181_v56, %v180_v53  ;;  %v196_v62 = vadd.f32 %v195_v57, %v194_v54  ;;  %v144_v63 = vpop.f32.mrf.mxu2  ;;  %v154_v0 = vpop.f32.mrf.mxu3 }
  0xa6   :  { %v168_v3 = vmax.f32 %v144_v63, 0.0  ;;  %v172_v4 = vmax.f32 %v154_v0, 0.0 }
  0xa7   :  { %v183_v6 = vrot.slane %v182_v61, 2  ;;  %v197_v7 = vrot.slane %v196_v62, 2 }
  0xa8   :  { %v208_v8 = vadd.f32 %v168_v3, %v167_v1  ;;  %v222_v9 = vadd.f32 %v172_v4, %v171_v2 }
  0xa9   :  { %v184_v12 = vadd.f32 %v183_v6, %v182_v61  ;;  %v198_v13 = vadd.f32 %v197_v7, %v196_v62 }
  0xaa   :  { %v209_v15 = vrot.slane %v208_v8, 4  ;;  %v223_v16 = vrot.slane %v222_v9, 4 }
  0xab   :  { %v185_v18 = vrot.slane %v184_v12, 1  ;;  %v199_v19 = vrot.slane %v198_v13, 1 }
  0xac   :  { %v210_v20 = vadd.f32 %v209_v15, %v208_v8  ;;  %v224_v21 = vadd.f32 %v223_v16, %v222_v9 }
  0xad   :  { %v186_v24 = vadd.f32 %v185_v18, %v184_v12  ;;  %v200_v30 = vadd.f32 %v199_v19, %v198_v13 }
  0xae   :  { %v211_v26 = vrot.slane %v210_v20, 2  ;;  %v225_v27 = vrot.slane %v224_v21, 2 }
  0xaf   :  { %v238_v29 = vsel %vm237_vm3, %v186_v24, %v179_v22 }
  0xb0   :  { %v240_v31 = vsel %vm239_vm4, %v193_v25, %v238_v29  ;;  %v212_v32 = vadd.f32 %v211_v26, %v210_v20  ;;  %v226_v33 = vadd.f32 %v225_v27, %v224_v21 }
  0xb1   :  { %v242_v35 = vsel %vm241_vm5, %v200_v30, %v240_v31 }
  0xb2   :  { %v213_v36 = vrot.slane %v212_v32, 1  ;;  %v227_v37 = vrot.slane %v226_v33, 1  ;;  %v244_v41 = vsel %vm243_vm6, %v207_v38, %v242_v35 }
  0xb4   :  { %v214_v39 = vadd.f32 %v213_v36, %v212_v32  ;;  %v228_v42 = vadd.f32 %v227_v37, %v226_v33 }
  0xb6   :  { %v246_v43 = vsel %vm245_vm7, %v214_v39, %v244_v41 }
  0xb7   :  { %v248_v44 = vsel %vm247_vm8, %v221_v40, %v246_v43 }
  0xb8   :  { %v250_v45 = vsel %vm249_vm9, %v228_v42, %v248_v44 }
  0xb9   :  { %252 = vst [vmem:[#allocation2] sm:$0xff] %v250_v45 }
  0xba   :  { %263 = dma.vmem_to_hbm [thread:$0]  %s259_s28, 128, %s261_s3, [#allocation3]  }
  0xbb   :  { %351 = dma.done.wait [#allocation3], 128  }
  0xbc   :  { %352 = vsyncadd [#allocation3], 4294967168 }
  0xbd   :  { %268 = vsyncpa [#allocation3], 1 }

</bundles_post_ra>
